<compile_context>
chip_gen: v6e
topology: v6e:2x2x1
jax: 0.10.0
libtpu: 0.0.40
codegen_flags: <defaults>
</compile_context>

<pallas_src>
import functools

import jax
import jax.numpy as jnp
from jax.experimental import pallas as pl
from jax.experimental.pallas import tpu as pltpu

D_IN = 6        # 3 point coords + 3 normal coords
H1 = 64
H2 = 128


def _mlp_kernel(pts_ref, nrm_ref, w1a_ref, w1b_ref, b1_ref,
                w2_ref, b2_ref, w3_ref, b3_ref, o_ref):
    """Per-row-tile 3-layer MLP: (tm, 3)+(tm, 3) -> (tm, d_embed)."""
    pts = pts_ref[...]
    nrm = nrm_ref[...]

    # Layer 1 (fused concat): K=3 matmuls on the MXU, f32 accumulation.
    h = (jnp.dot(pts, w1a_ref[...], preferred_element_type=jnp.float32)
         + jnp.dot(nrm, w1b_ref[...], preferred_element_type=jnp.float32)
         + b1_ref[...])
    h = jnp.maximum(h, 0.0)

    # Layer 2. Cast operand to the weight dtype (no-op when f32).
    h = jnp.dot(h.astype(w2_ref.dtype), w2_ref[...],
                preferred_element_type=jnp.float32) + b2_ref[...]
    h = jnp.maximum(h, 0.0)

    # Layer 3.
    out = jnp.dot(h.astype(w3_ref.dtype), w3_ref[...],
                  preferred_element_type=jnp.float32) + b3_ref[...]
    o_ref[...] = out.astype(o_ref.dtype)


def _round_up(x, m):
    return ((x + m - 1) // m) * m


@functools.partial(jax.jit,
                   static_argnames=("d_embed", "tm", "out_dtype", "mxu_bf16"))
def pointnet_backbone(points, normals, params, *, d_embed=256, tm=1024,
                      out_dtype=jnp.float32, mxu_bf16=False):
    """points, normals: (B, L, 3) f32 -> (x_pad (B, L, d_embed), mask (B, L) bool)."""
    B, L, _ = points.shape
    w1, b1, w2, b2, w3, b3 = params

    n = B * L
    # Clamp the row tile for tiny inputs; keep sublane (8) alignment.
    tm_eff = min(tm, _round_up(n, 8))
    grid = (pl.cdiv(n, tm_eff),)

    # Glue: flatten to row-major (N, 3) views (free, contiguous reshape).
    pts = points.reshape(n, 3)
    nrm = normals.reshape(n, 3)

    # Split W1 so the concat never materializes.
    w1a = w1[:3]
    w1b = w1[3:]

    if mxu_bf16:
        # bf16 MXU operands for the K=64 / K=128 layers (f32 accumulation).
        w2 = w2.astype(jnp.bfloat16)
        w3 = w3.astype(jnp.bfloat16)

    # Biases presented as (1, C) so they broadcast over the row tile.
    b1_2d = b1.reshape(1, H1)
    b2_2d = b2.reshape(1, H2)
    b3_2d = b3.reshape(1, d_embed)

    rows = lambda i: (i, 0)   # row tiles march down the point axis
    full = lambda i: (0, 0)   # weights/biases: same whole-array block -> VMEM resident

    out = pl.pallas_call(
        _mlp_kernel,
        out_shape=jax.ShapeDtypeStruct((n, d_embed), out_dtype),
        grid_spec=pltpu.PrefetchScalarGridSpec(
            num_scalar_prefetch=0,
            grid=grid,
            in_specs=[
                pl.BlockSpec((tm_eff, 3), rows),        # points rows
                pl.BlockSpec((tm_eff, 3), rows),        # normals rows
                pl.BlockSpec((3, H1), full),            # W1a
                pl.BlockSpec((3, H1), full),            # W1b
                pl.BlockSpec((1, H1), full),            # b1
                pl.BlockSpec((H1, H2), full),           # W2
                pl.BlockSpec((1, H2), full),            # b2
                pl.BlockSpec((H2, d_embed), full),      # W3
                pl.BlockSpec((1, d_embed), full),       # b3
            ],
            out_specs=pl.BlockSpec((tm_eff, d_embed), rows),
        ),
        compiler_params=pltpu.CompilerParams(
            dimension_semantics=("parallel",),
        ),
    )(pts, nrm, w1a, w1b, b1_2d, w2, b2_2d, w3, b3_2d)

    x_pad = out.reshape(B, L, d_embed)
    mask = jnp.ones((B, L), dtype=jnp.bool_)
    return x_pad, mask


def init_params(key, d_embed=256):
    """Deterministic synthetic init (PyTorch Linear-style uniform fan-in bounds)."""
    ks = jax.random.split(key, 6)

    def lin(kw, kb, fan_in, fan_out):
        bound = 1.0 / jnp.sqrt(float(fan_in))
        w = jax.random.uniform(kw, (fan_in, fan_out), jnp.float32, -bound, bound)
        b = jax.random.uniform(kb, (fan_out,), jnp.float32, -bound, bound)
        return w, b

    w1, b1 = lin(ks[0], ks[1], D_IN, H1)
    w2, b2 = lin(ks[2], ks[3], H1, H2)
    w3, b3 = lin(ks[4], ks[5], H2, d_embed)
    return (w1, b1, w2, b2, w3, b3)


def reference(points, normals, params):
    """Pure-JAX reference matching the PyTorch forward."""
    w1, b1, w2, b2, w3, b3 = params
    x = jnp.concatenate([points, normals], axis=-1)
    x = jnp.maximum(x @ w1 + b1, 0.0)
    x = jnp.maximum(x @ w2 + b2, 0.0)
    x = x @ w3 + b3
    mask = jnp.ones(x.shape[:2], dtype=jnp.bool_)
    return x, mask


if __name__ == "__main__":
    key = jax.random.PRNGKey(0)
    k_pts, k_nrm, k_par = jax.random.split(key, 3)

    B, L, d_embed = 2, 16, 256
    points = jax.random.normal(k_pts, (B, L, 3), jnp.float32)
    normals = jax.random.normal(k_nrm, (B, L, 3), jnp.float32)
    params = init_params(k_par, d_embed=d_embed)

    x_ref, mask_ref = reference(points, normals, params)

    # Exact (f32) path: matches the PyTorch module numerics.
    x_pad, mask = pointnet_backbone(points, normals, params, d_embed=d_embed)
    x_pad = jax.block_until_ready(x_pad)
    mask = jax.block_until_ready(mask)
    assert x_pad.shape == (B, L, d_embed)
    assert mask.shape == (B, L) and bool(jnp.all(mask))
    assert jnp.allclose(x_pad, x_ref, atol=1e-5, rtol=1e-5)

    # Fast (bf16 writeback + bf16 MXU operands) path: halves dominant HBM traffic.
    x_bf16, mask_b = pointnet_backbone(points, normals, params, d_embed=d_embed,
                                       out_dtype=jnp.bfloat16, mxu_bf16=True)
    x_bf16 = jax.block_until_ready(x_bf16)
    assert x_bf16.dtype == jnp.bfloat16
    assert bool(jnp.all(jnp.isfinite(x_bf16.astype(jnp.float32))))
    assert jnp.allclose(x_bf16.astype(jnp.float32), x_ref, atol=5e-2, rtol=5e-2)

    print("KERNEL_OK")
</pallas_src>

<mosaic_0001>
module attributes {stable_mosaic.version = 11 : i64} {
  func.func @_mlp_kernel(%arg0: i32, %arg1: memref<32x3xf32, #tpu.memory_space<vmem>>, %arg2: memref<32x3xf32, #tpu.memory_space<vmem>>, %arg3: memref<3x64xf32, #tpu.memory_space<vmem>>, %arg4: memref<3x64xf32, #tpu.memory_space<vmem>>, %arg5: memref<1x64xf32, #tpu.memory_space<vmem>>, %arg6: memref<64x128xf32, #tpu.memory_space<vmem>>, %arg7: memref<1x128xf32, #tpu.memory_space<vmem>>, %arg8: memref<128x256xf32, #tpu.memory_space<vmem>>, %arg9: memref<1x256xf32, #tpu.memory_space<vmem>>, %arg10: memref<32x256xf32, #tpu.memory_space<vmem>>) attributes {dimension_semantics = [#tpu.dimension_semantics<parallel>], iteration_bounds = array<i64: 1>, scalar_prefetch = 0 : i64, scratch_operands = 0 : i64, tpu.core_type = #tpu.core_type<tc>, window_params = [{transform_indices = @transform_0, window_bounds = array<i64: 32, 3>}, {transform_indices = @transform_1, window_bounds = array<i64: 32, 3>}, {pipeline_mode = #tpu.pipeline_mode<synchronous>, transform_indices = @transform_2, window_bounds = array<i64: 3, 64>}, {pipeline_mode = #tpu.pipeline_mode<synchronous>, transform_indices = @transform_3, window_bounds = array<i64: 3, 64>}, {pipeline_mode = #tpu.pipeline_mode<synchronous>, transform_indices = @transform_4, window_bounds = array<i64: 1, 64>}, {pipeline_mode = #tpu.pipeline_mode<synchronous>, transform_indices = @transform_5, window_bounds = array<i64: 64, 128>}, {pipeline_mode = #tpu.pipeline_mode<synchronous>, transform_indices = @transform_6, window_bounds = array<i64: 1, 128>}, {pipeline_mode = #tpu.pipeline_mode<synchronous>, transform_indices = @transform_7, window_bounds = array<i64: 128, 256>}, {pipeline_mode = #tpu.pipeline_mode<synchronous>, transform_indices = @transform_8, window_bounds = array<i64: 1, 256>}, {transform_indices = @transform_9, window_bounds = array<i64: 32, 256>}]} {
    %c0 = arith.constant 0 : index
    %c0_0 = arith.constant 0 : index
    %0 = vector.load %arg1[%c0, %c0_0] : memref<32x3xf32, #tpu.memory_space<vmem>>, vector<32x3xf32>
    %c0_1 = arith.constant 0 : index
    %c0_2 = arith.constant 0 : index
    %1 = vector.load %arg2[%c0_1, %c0_2] : memref<32x3xf32, #tpu.memory_space<vmem>>, vector<32x3xf32>
    %c0_3 = arith.constant 0 : index
    %c0_4 = arith.constant 0 : index
    %2 = vector.load %arg3[%c0_3, %c0_4] : memref<3x64xf32, #tpu.memory_space<vmem>>, vector<3x64xf32>
    %cst = arith.constant dense<0.000000e+00> : vector<32x64xf32>
    %3 = tpu.matmul %0, %2, %cst {dimension_numbers = #tpu.dot_dimension_numbers<[1], [0], [0], [1], [0, 0, 1, 1], [], []>} : vector<32x3xf32>, vector<3x64xf32>, vector<32x64xf32> -> vector<32x64xf32>
    %c0_5 = arith.constant 0 : index
    %c0_6 = arith.constant 0 : index
    %4 = vector.load %arg4[%c0_5, %c0_6] : memref<3x64xf32, #tpu.memory_space<vmem>>, vector<3x64xf32>
    %cst_7 = arith.constant dense<0.000000e+00> : vector<32x64xf32>
    %5 = tpu.matmul %1, %4, %cst_7 {dimension_numbers = #tpu.dot_dimension_numbers<[1], [0], [0], [1], [0, 0, 1, 1], [], []>} : vector<32x3xf32>, vector<3x64xf32>, vector<32x64xf32> -> vector<32x64xf32>
    %6 = arith.addf %3, %5 : vector<32x64xf32>
    %c0_8 = arith.constant 0 : index
    %c0_9 = arith.constant 0 : index
    %7 = vector.load %arg5[%c0_8, %c0_9] : memref<1x64xf32, #tpu.memory_space<vmem>>, vector<1x64xf32>
    %8 = vector.broadcast %7 : vector<1x64xf32> to vector<32x64xf32>
    %9 = arith.addf %6, %8 : vector<32x64xf32>
    %cst_10 = arith.constant 0.000000e+00 : f32
    %10 = vector.broadcast %cst_10 : f32 to vector<32x64xf32>
    %11 = arith.maximumf %9, %10 : vector<32x64xf32>
    %c0_11 = arith.constant 0 : index
    %c0_12 = arith.constant 0 : index
    %12 = vector.load %arg6[%c0_11, %c0_12] : memref<64x128xf32, #tpu.memory_space<vmem>>, vector<64x128xf32>
    %cst_13 = arith.constant dense<0.000000e+00> : vector<32x128xf32>
    %13 = tpu.matmul %11, %12, %cst_13 {dimension_numbers = #tpu.dot_dimension_numbers<[1], [0], [0], [1], [0, 0, 1, 1], [], []>} : vector<32x64xf32>, vector<64x128xf32>, vector<32x128xf32> -> vector<32x128xf32>
    %c0_14 = arith.constant 0 : index
    %c0_15 = arith.constant 0 : index
    %14 = vector.load %arg7[%c0_14, %c0_15] : memref<1x128xf32, #tpu.memory_space<vmem>>, vector<1x128xf32>
    %15 = vector.broadcast %14 : vector<1x128xf32> to vector<32x128xf32>
    %16 = arith.addf %13, %15 : vector<32x128xf32>
    %cst_16 = arith.constant 0.000000e+00 : f32
    %17 = vector.broadcast %cst_16 : f32 to vector<32x128xf32>
    %18 = arith.maximumf %16, %17 : vector<32x128xf32>
    %c0_17 = arith.constant 0 : index
    %c0_18 = arith.constant 0 : index
    %19 = vector.load %arg8[%c0_17, %c0_18] : memref<128x256xf32, #tpu.memory_space<vmem>>, vector<128x256xf32>
    %cst_19 = arith.constant dense<0.000000e+00> : vector<32x256xf32>
    %20 = tpu.matmul %18, %19, %cst_19 {dimension_numbers = #tpu.dot_dimension_numbers<[1], [0], [0], [1], [0, 0, 1, 1], [], []>} : vector<32x128xf32>, vector<128x256xf32>, vector<32x256xf32> -> vector<32x256xf32>
    %c0_20 = arith.constant 0 : index
    %c0_21 = arith.constant 0 : index
    %21 = vector.load %arg9[%c0_20, %c0_21] : memref<1x256xf32, #tpu.memory_space<vmem>>, vector<1x256xf32>
    %22 = vector.broadcast %21 : vector<1x256xf32> to vector<32x256xf32>
    %23 = arith.addf %20, %22 : vector<32x256xf32>
    %c0_22 = arith.constant 0 : index
    %c0_23 = arith.constant 0 : index
    %24 = vector.load %arg10[%c0_22, %c0_23] : memref<32x256xf32, #tpu.memory_space<vmem>>, vector<32x256xf32>
    tpu.vector_store %arg10[%c0_22, %c0_23], %23 {strides = array<i32>} : memref<32x256xf32, #tpu.memory_space<vmem>>, vector<32x256xf32>,
    return
  }
  func.func @transform_0(%arg0: i32) -> (i32, i32) {
    %c0_i32 = arith.constant 0 : i32
    %c0_i32_0 = arith.constant 0 : i32
    return %arg0, %c0_i32 : i32, i32
  }
  func.func @transform_1(%arg0: i32) -> (i32, i32) {
    %c0_i32 = arith.constant 0 : i32
    %c0_i32_0 = arith.constant 0 : i32
    return %arg0, %c0_i32 : i32, i32
  }
  func.func @transform_2(%arg0: i32) -> (i32, i32) {
    %c0_i32 = arith.constant 0 : i32
    %c0_i32_0 = arith.constant 0 : i32
    %c0_i32_1 = arith.constant 0 : i32
    return %c0_i32, %c0_i32_0 : i32, i32
  }
  func.func @transform_3(%arg0: i32) -> (i32, i32) {
    %c0_i32 = arith.constant 0 : i32
    %c0_i32_0 = arith.constant 0 : i32
    %c0_i32_1 = arith.constant 0 : i32
    return %c0_i32, %c0_i32_0 : i32, i32
  }
  func.func @transform_4(%arg0: i32) -> (i32, i32) {
    %c0_i32 = arith.constant 0 : i32
    %c0_i32_0 = arith.constant 0 : i32
    %c0_i32_1 = arith.constant 0 : i32
    return %c0_i32, %c0_i32_0 : i32, i32
  }
  func.func @transform_5(%arg0: i32) -> (i32, i32) {
    %c0_i32 = arith.constant 0 : i32
    %c0_i32_0 = arith.constant 0 : i32
    %c0_i32_1 = arith.constant 0 : i32
    return %c0_i32, %c0_i32_0 : i32, i32
  }
  func.func @transform_6(%arg0: i32) -> (i32, i32) {
    %c0_i32 = arith.constant 0 : i32
    %c0_i32_0 = arith.constant 0 : i32
    %c0_i32_1 = arith.constant 0 : i32
    return %c0_i32, %c0_i32_0 : i32, i32
  }
  func.func @transform_7(%arg0: i32) -> (i32, i32) {
    %c0_i32 = arith.constant 0 : i32
    %c0_i32_0 = arith.constant 0 : i32
    %c0_i32_1 = arith.constant 0 : i32
    return %c0_i32, %c0_i32_0 : i32, i32
  }
  func.func @transform_8(%arg0: i32) -> (i32, i32) {
    %c0_i32 = arith.constant 0 : i32
    %c0_i32_0 = arith.constant 0 : i32
    %c0_i32_1 = arith.constant 0 : i32
    return %c0_i32, %c0_i32_0 : i32, i32
  }
  func.func @transform_9(%arg0: i32) -> (i32, i32) {
    %c0_i32 = arith.constant 0 : i32
    %c0_i32_0 = arith.constant 0 : i32
    return %arg0, %c0_i32 : i32, i32
  }
}

</mosaic_0001>

<bundles_post_ra>
// kernel: pointnet_backbone.1
= control target key start
LH: loop header
LB: loop body
LE: loop exit
PB: predicated region body
PF: predicated region fallthrough
CT: control target
= control target key end

     0   :  { %14 = vsyncpa [#allocation3], 0  ;;  %s812_s0 = inlined_call_operand.vmem [shape: f32[32,3], index: 0, kind: input, shape index: {}]   ;;  %s813_s1 = inlined_call_operand.vmem [shape: f32[32,3], index: 1, kind: input, shape index: {}]   ;;  %s814_s2 = inlined_call_operand.vmem [shape: f32[3,64], index: 2, kind: input, shape index: {}]   ;;  %s815_s3 = inlined_call_operand.vmem [shape: f32[3,64], index: 3, kind: input, shape index: {}]   ;;  %s816_s4 = inlined_call_operand.vmem [shape: f32[1,64], index: 4, kind: input, shape index: {}]   ;;  %s817_s5 = inlined_call_operand.vmem [shape: f32[64,128], index: 5, kind: input, shape index: {}]   ;;  %s818_s6 = inlined_call_operand.vmem [shape: f32[1,128], index: 6, kind: input, shape index: {}]   ;;  %s819_s7 = inlined_call_operand.hbm [shape: f32[128,256], index: 7, kind: input, shape index: {}]   ;;  %s820_s8 = inlined_call_operand.vmem [shape: f32[1,256], index: 8, kind: input, shape index: {}]   ;;  %s821_s9 = inlined_call_operand.hbm [shape: f32[32,256], index: 9, kind: output, shape index: {}]  }
   0x1   :  { %15 = vsyncpa [#allocation4], 0  ;;  %s674_s30 = smov [#allocation2]  }
   0x2   :  { %s35_s10 = sshll.u32 %s674_s30, 4  ;;  %s36_s10 = int_to_ptr.vmem [resolvable:$true] %s35_s10 }
   0x3   :  { %s638_s11 = scalar_lea.vmem %s36_s10, 4096  ;;  %p643_p1 = scmp.lt.s32.totalorder %s36_s10, %s36_s10 }
   0x4   :  { %p639_p0 = scmp.ne.s32.totalorder %s36_s10, %s638_s11  ;;  %p644_p2 = scmp.lt.s32.totalorder %s638_s11, %s638_s11 }
   0x6   :  { %p645_p3 = por %p644_p2, %p643_p1 }
   0x8   :  { %p646_p4 = pnand %p645_p3, %p639_p0 }
   0xa   :  { %649 = shalt.err (!%p646_p4)
}
   0xb   :  { %s675_s12 = smov 256   ;;  %s676_s13 = smov 16  }
   0xc   :  { %41 = dma.hbm_to_vmem [thread:$0]  %s819_s7, 4096, %s36_s10, [#allocation3], %s675_s12, %s675_s12, %s676_s13  }
   0xd   :  { %670 = dma.done.wait [#allocation3], 4096  }
   0xe   :  { %671 = vsyncadd [#allocation3], 4294963200  ;;  %vm70_vm0 = vcmask 1042432   ;;  %vm57_vm1 = vcmask 23552   ;;  %v56_v0 = vld [vmem:[%s815_s3] sm:$0x7] }
   0xf   :  { %v51_v1 = vld [vmem:[%s813_s1] sm:$0xff]  ;;  %v52_v2 = vld [vmem:[%s813_s1 + $0x8] sm:$0xff]  ;;  %587 = vmatprep.subr.msk.mxu0 %vm70_vm0, %v56_v0  ;;  %v53_v4 = vld [vmem:[%s813_s1 + $0x10] sm:$0xff]  ;;  %vm289_vm2 = vcmask 523264  }
  0x10   :  { %589 = vmatprep.mubr.msk.f32.mxu0 %vm57_vm1, %v51_v1  ;;  %v55_v3 = vld [vmem:[%s814_s2] sm:$0x7]  ;;  %588 = vmatpush3.msk.msra.mxu0 %vm70_vm0, %v56_v0  ;;  %v54_v5 = vld [vmem:[%s813_s1 + $0x18] sm:$0xff]  ;;  %v48_v7 = vld [vmem:[%s812_s0 + $0x8] sm:$0xff] }
  0x11   :  { %590 = vmatmul.mubr.msk.f32.vlgmr.msra.gmra.mxu0 %vm57_vm1, %v52_v2  ;;  %595 = vmatprep.subr.msk.mxu0 %vm70_vm0, %v55_v3  ;;  %v47_v6 = vld [vmem:[%s812_s0] sm:$0xff]  ;;  %v49_v8 = vld [vmem:[%s812_s0 + $0x10] sm:$0xff]  ;;  %v50_v9 = vld [vmem:[%s812_s0 + $0x18] sm:$0xff] }
  0x12   :  { %596 = vmatpush3.msk.msra.mxu0 %vm70_vm0, %v55_v3  ;;  %592 = vmatprep.mubr.msk.f32.mxu0 %vm57_vm1, %v53_v4  ;;  %v281_v10 = vld [vmem:[%s817_s5 + $0x38] sm:$0xff]  ;;  %v280_v11 = vld [vmem:[%s817_s5 + $0x30] sm:$0xff]  ;;  %v279_v12 = vld [vmem:[%s817_s5 + $0x28] sm:$0xff] }
  0x13   :  { %603 = vmatprep.subr.mxu0 %v281_v10  ;;  %v278_v13 = vld [vmem:[%s817_s5 + $0x20] sm:$0xff]  ;;  %v277_v14 = vld [vmem:[%s817_s5 + $0x18] sm:$0xff]  ;;  %v276_v15 = vld [vmem:[%s817_s5 + $0x10] sm:$0xff] }
  0x14   :  { %v275_v16 = vld [vmem:[%s817_s5 + $0x8] sm:$0xff]  ;;  %v274_v17 = vld [vmem:[%s817_s5] sm:$0xff]  ;;  %v422_v18 = vld [vmem:[#allocation2 + $0xf8] sm:$0xff] }
  0x15   :  { %593 = vmatmul.mubr.msk.f32.gmra.mxu0 %vm57_vm1, %v54_v5  ;;  %v421_v19 = vld [vmem:[#allocation2 + $0xf0] sm:$0xff]  ;;  %v420_v20 = vld [vmem:[#allocation2 + $0xe8] sm:$0xff]  ;;  %435 = vmatprep.subr.mxu1 %v422_v18  ;;  %v419_v21 = vld [vmem:[#allocation2 + $0xe0] sm:$0xff] }
  0x16   :  { %597 = vmatprep.mubr.msk.f32.mxu0 %vm57_vm1, %v47_v6  ;;  %436 = vmatpush1.msra.mxu1 %v421_v19  ;;  %v418_v22 = vld [vmem:[#allocation2 + $0xd8] sm:$0xff]  ;;  %v417_v23 = vld [vmem:[#allocation2 + $0xd0] sm:$0xff]  ;;  %v416_v24 = vld [vmem:[#allocation2 + $0xc8] sm:$0xff] }
  0x17   :  { %437 = vmatprep.subr.mxu1 %v420_v20  ;;  %v415_v25 = vld [vmem:[#allocation2 + $0xc0] sm:$0xff]  ;;  %v414_v26 = vld [vmem:[#allocation2 + $0xb8] sm:$0xff]  ;;  %v413_v27 = vld [vmem:[#allocation2 + $0xb0] sm:$0xff] }
  0x18   :  { %438 = vmatpush1.msra.mxu1 %v419_v21  ;;  %v412_v28 = vld [vmem:[#allocation2 + $0xa8] sm:$0xff]  ;;  %v411_v29 = vld [vmem:[#allocation2 + $0xa0] sm:$0xff]  ;;  %v410_v30 = vld [vmem:[#allocation2 + $0x98] sm:$0xff]  ;;  %v425_v21 = vlaneseq }
  0x19   :  { %598 = vmatmul.mubr.msk.f32.vlgmr.msra.gmra.mxu0 %vm57_vm1, %v48_v7  ;;  %439 = vmatprep.subr.mxu1 %v418_v22  ;;  %v409_v31 = vld [vmem:[#allocation2 + $0x90] sm:$0xff]  ;;  %v408_v32 = vld [vmem:[#allocation2 + $0x88] sm:$0xff]  ;;  %v407_v33 = vld [vmem:[#allocation2 + $0x80] sm:$0xff]  ;;  %v677_v7 = vmov 0.0  }
  0x1a   :  { %600 = vmatprep.mubr.msk.f32.mxu0 %vm57_vm1, %v49_v8  ;;  %604 = vmatpush3.msra.mxu0 %v281_v10  ;;  %v406_v34 = vld [vmem:[#allocation2 + $0x78] sm:$0xff]  ;;  %v405_v35 = vld [vmem:[#allocation2 + $0x70] sm:$0xff]  ;;  %v404_v36 = vld [vmem:[#allocation2 + $0x68] sm:$0xff]  ;;  %v426_v22 = vshrl.u32 %v425_v21, 7 }
  0x1b   :  { %605 = vmatprep.subr.mxu0 %v280_v11  ;;  %440 = vmatpush1.msra.mxu1 %v417_v23  ;;  %v403_v37 = vld [vmem:[#allocation2 + $0x60] sm:$0xff]  ;;  %v402_v38 = vld [vmem:[#allocation2 + $0x58] sm:$0xff]  ;;  %v401_v39 = vld [vmem:[#allocation2 + $0x50] sm:$0xff] }
  0x1c   :  { %606 = vmatpush3.msra.mxu0 %v280_v11  ;;  %441 = vmatprep.subr.mxu1 %v416_v24  ;;  %v400_v40 = vld [vmem:[#allocation2 + $0x48] sm:$0xff]  ;;  %v399_v41 = vld [vmem:[#allocation2 + $0x40] sm:$0xff]  ;;  %v398_v42 = vld [vmem:[#allocation2 + $0x38] sm:$0xff]  ;;  %v427_v23 = vsub.s32 0, %v426_v22 }
  0x1d   :  { %601 = vmatmul.mubr.msk.f32.gmra.mxu0 %vm57_vm1, %v50_v9  ;;  %607 = vmatprep.subr.mxu0 %v279_v12  ;;  %v559_v49 = vld [vmem:[%s816_s4] ss:$0 sm:$0xff]  ;;  %v397_v0 = vld [vmem:[#allocation2 + $0x30] sm:$0xff]  ;;  %v396_v1 = vld [vmem:[#allocation2 + $0x28] sm:$0xff] }
  0x1e   :  { %608 = vmatpush3.msra.mxu0 %v279_v12  ;;  %442 = vmatpush1.msra.mxu1 %v415_v25  ;;  %v395_v2 = vld [vmem:[#allocation2 + $0x20] sm:$0xff]  ;;  %v394_v3 = vld [vmem:[#allocation2 + $0x18] sm:$0xff]  ;;  %v393_v4 = vld [vmem:[#allocation2 + $0x10] sm:$0xff]  ;;  %v431_v25 = vsub.s32 1, %v426_v22 }
  0x1f   :  { %609 = vmatprep.subr.mxu0 %v278_v13  ;;  %443 = vmatprep.subr.mxu1 %v414_v26  ;;  %v392_v5 = vld [vmem:[#allocation2 + $0x8] sm:$0xff]  ;;  %v391_v6 = vld [vmem:[#allocation2] sm:$0xff] }
  0x20   :  { %610 = vmatpush3.msra.mxu0 %v278_v13  ;;  %444 = vmatpush1.msra.mxu1 %v413_v27  ;;  %v560_v9 = vld [vmem:[%s818_s6] ss:$0 sm:$0xff] }
  0x21   :  { %611 = vmatprep.subr.mxu0 %v277_v14  ;;  %445 = vmatprep.subr.mxu1 %v412_v28  ;;  %v423_v24 = vld [vmem:[%s820_s8] sm:$0x3]  ;;  %s678_s8 = smov [#allocation5]  }
  0x22   :  { %612 = vmatpush3.msra.mxu0 %v277_v14  ;;  %446 = vmatpush1.msra.mxu1 %v411_v29  ;;  %v428_v26 = vrot.slane %v423_v24, %v427_v23  ;;  %v432_v27 = vrot.slane %v423_v24, %v431_v25  ;;  %s537_s28 = sshll.u32 %s678_s8, 4  ;;  %s538_s28 = int_to_ptr.vmem [resolvable:$true] %s537_s28 }
  0x23   :  { %613 = vmatprep.subr.mxu0 %v276_v15  ;;  %447 = vmatprep.subr.mxu1 %v410_v30  ;;  %s650_s29 = scalar_lea.vmem %s538_s28, 1024  ;;  %p655_p6 = scmp.lt.s32.totalorder %s538_s28, %s538_s28 }
  0x24   :  { %614 = vmatpush3.msra.mxu0 %v276_v15  ;;  %448 = vmatpush1.msra.mxu1 %v409_v31  ;;  %p651_p5 = scmp.ne.s32.totalorder %s538_s28, %s650_s29  ;;  %p656_p7 = scmp.lt.s32.totalorder %s650_s29, %s650_s29 }
  0x25   :  { %615 = vmatprep.subr.mxu0 %v275_v16  ;;  %449 = vmatprep.subr.mxu1 %v408_v32 }
  0x26   :  { %616 = vmatpush3.msra.mxu0 %v275_v16  ;;  %450 = vmatpush1.msra.mxu1 %v407_v33  ;;  %p657_p8 = por %p656_p7, %p655_p6 }
  0x27   :  { %617 = vmatprep.subr.mxu0 %v274_v17  ;;  %451 = vmatprep.subr.mxu1 %v406_v34 }
  0x28   :  { %618 = vmatpush3.msra.mxu0 %v274_v17  ;;  %452 = vmatpush1.msra.mxu1 %v405_v35  ;;  %p658_p9 = pnand %p657_p8, %p651_p5 }
  0x29   :  { %453 = vmatprep.subr.mxu1 %v404_v36  ;;  %499 = vmatprep.mubr.f32.mxu1 %v677_v7 }
  0x2a   :  { %454 = vmatpush1.msra.mxu1 %v403_v37 }
  0x2b   :  { %455 = vmatprep.subr.mxu1 %v402_v38 }
  0x2c   :  { %456 = vmatpush1.msra.mxu1 %v401_v39 }
  0x2d   :  { %457 = vmatprep.subr.mxu1 %v400_v40 }
  0x2e   :  { %458 = vmatpush1.msra.mxu1 %v399_v41 }
  0x2f   :  { %459 = vmatprep.subr.mxu1 %v398_v42 }
  0x30   :  { %460 = vmatpush1.msra.mxu1 %v397_v0 }
  0x31   :  { %461 = vmatprep.subr.mxu1 %v396_v1 }
  0x32   :  { %462 = vmatpush1.msra.mxu1 %v395_v2 }
  0x33   :  { %463 = vmatprep.subr.mxu1 %v394_v3 }
  0x34   :  { %464 = vmatpush1.msra.mxu1 %v393_v4 }
  0x35   :  { %465 = vmatprep.subr.mxu1 %v392_v5 }
  0x36   :  { %466 = vmatpush1.msra.mxu1 %v391_v6 }
  0xd1   :  { %v591_v43 = vpop.f32.mrf.mxu0 }
  0xd3   :  { %v140_v44 = vpop.f32.mrf.mxu0 }
  0xd5   :  { %v594_v45 = vpop.f32.mrf.mxu0 }
  0xd7   :  { %v150_v46 = vpop.f32.mrf.mxu0 }
  0xd9   :  { %v599_v47 = vpop.f32.mrf.mxu0 }
  0xda   :  { %v246_v48 = vadd.f32 %v599_v47, %v591_v43 }
  0xdb   :  { %v240_v50 = vpop.f32.mrf.mxu0 }
  0xdc   :  { %v241_v51 = vadd.f32 %v240_v50, %v140_v44  ;;  %v267_v52 = vadd.f32 %v559_v49, %v246_v48 }
  0xdd   :  { %v602_v53 = vpop.f32.mrf.mxu0 }
  0xde   :  { %v266_v54 = vadd.f32 %v559_v49, %v241_v51  ;;  %v256_v55 = vadd.f32 %v602_v53, %v594_v45  ;;  %v271_v59 = vmax.f32 %v267_v52, 0.0 }
  0xdf   :  { %v250_v56 = vpop.f32.mrf.mxu0 }
  0xe0   :  { %v270_v57 = vmax.f32 %v266_v54, 0.0  ;;  %v251_v58 = vadd.f32 %v250_v56, %v150_v46  ;;  %v269_v60 = vadd.f32 %v559_v49, %v256_v55 }
  0xe2   :  { %v268_v61 = vadd.f32 %v559_v49, %v251_v58  ;;  %619 = vmatprep.mubr.msk.f32.mxu0 %vm289_vm2, %v270_v57  ;;  %v273_v63 = vmax.f32 %v269_v60, 0.0 }
  0xe3   :  { %620 = vmatmul.mubr.msk.f32.vlgmr.msra.gmra.mxu0 %vm289_vm2, %v271_v59 }
  0xe4   :  { %v272_v62 = vmax.f32 %v268_v61, 0.0 }
  0xe6   :  { %622 = vmatprep.mubr.msk.f32.mxu0 %vm289_vm2, %v272_v62 }
  0xe7   :  { %623 = vmatmul.mubr.msk.f32.gmra.mxu0 %vm289_vm2, %v273_v63 }
 0x1a3   :  { %v621_v8 = vpop.f32.mrf.mxu0 }
 0x1a4   :  { %v374_v13 = vadd.f32 %v621_v8, %v560_v9 }
 0x1a5   :  { %v368_v10 = vpop.f32.mrf.mxu0 }
 0x1a6   :  { %v369_v11 = vadd.f32 %v560_v9, %v368_v10  ;;  %v388_v16 = vmax.f32 %v374_v13, 0.0 }
 0x1a7   :  { %v624_v12 = vpop.f32.mrf.mxu0 }
 0x1a8   :  { %v387_v14 = vmax.f32 %v369_v11, 0.0  ;;  %v384_v18 = vadd.f32 %v624_v12, %v560_v9 }
 0x1a9   :  { %v378_v15 = vpop.f32.mrf.mxu0 }
 0x1aa   :  { %500 = vmatmul.mubr.f32.vlgmr.msra.gmra.mxu1 %v387_v14  ;;  %v379_v17 = vadd.f32 %v560_v9, %v378_v15  ;;  %v390_v20 = vmax.f32 %v384_v18, 0.0 }
 0x1ab   :  { %505 = vmatprep.mubr.f32.mxu1 %v677_v7 }
 0x1ac   :  { %v389_v19 = vmax.f32 %v379_v17, 0.0 }
 0x1ae   :  { %506 = vmatmul.mubr.f32.gmra.mxu1 %v388_v16 }
 0x1af   :  { %511 = vmatprep.mubr.f32.mxu1 %v677_v7 }
 0x1b2   :  { %512 = vmatmul.mubr.f32.gmra.mxu1 %v389_v19 }
 0x1b3   :  { %517 = vmatprep.mubr.f32.mxu1 %v677_v7 }
 0x1b6   :  { %518 = vmatmul.mubr.f32.gmra.mxu1 %v390_v20 }
 0x26a   :  { %v501_v28 = vpop.f32.mrf.mxu1 }
 0x26b   :  { %v502_v29 = vadd.f32 %v501_v28, %v428_v26 }
 0x26c   :  { %v503_v30 = vpop.f32.mrf.mxu1 }
 0x26d   :  { %524 = vst [vmem:[#allocation5] sm:$0xff] %v502_v29  ;;  %v504_v31 = vadd.f32 %v503_v30, %v432_v27 }
 0x26e   :  { %v507_v32 = vpop.f32.mrf.mxu1 }
 0x26f   :  { %525 = vst [vmem:[#allocation5 + $0x8] sm:$0xff] %v504_v31  ;;  %v508_v33 = vadd.f32 %v507_v32, %v428_v26 }
 0x270   :  { %v509_v34 = vpop.f32.mrf.mxu1 }
 0x271   :  { %526 = vst [vmem:[#allocation5 + $0x10] sm:$0xff] %v508_v33  ;;  %v510_v35 = vadd.f32 %v509_v34, %v432_v27 }
 0x272   :  { %v513_v36 = vpop.f32.mrf.mxu1 }
 0x273   :  { %527 = vst [vmem:[#allocation5 + $0x18] sm:$0xff] %v510_v35  ;;  %v514_v37 = vadd.f32 %v513_v36, %v428_v26 }
 0x274   :  { %v515_v38 = vpop.f32.mrf.mxu1 }
 0x275   :  { %528 = vst [vmem:[#allocation5 + $0x20] sm:$0xff] %v514_v37  ;;  %v516_v39 = vadd.f32 %v515_v38, %v432_v27 }
 0x276   :  { %v519_v40 = vpop.f32.mrf.mxu1 }
 0x277   :  { %529 = vst [vmem:[#allocation5 + $0x28] sm:$0xff] %v516_v39  ;;  %v520_v41 = vadd.f32 %v519_v40, %v428_v26 }
 0x278   :  { %v521_v42 = vpop.f32.mrf.mxu1 }
 0x279   :  { %530 = vst [vmem:[#allocation5 + $0x30] sm:$0xff] %v520_v41  ;;  %v522_v43 = vadd.f32 %v521_v42, %v432_v27 }
 0x27b   :  { %531 = vst [vmem:[#allocation5 + $0x38] sm:$0xff] %v522_v43 }
 0x27c   :  { %661 = shalt.err (!%p658_p9)
}
 0x27d   :  { %543 = dma.vmem_to_hbm [thread:$0]  %s538_s28, 1024, %s821_s9, [#allocation4], %s675_s12, %s675_s12, %s676_s13  }
 0x27e   :  { %672 = dma.done.wait [#allocation4], 1024  }
 0x27f   :  { %673 = vsyncadd [#allocation4], 4294966272 }
 0x280   :  { %547 = vsyncpa [#allocation3], 1 }
 0x281   :  { %548 = vsyncpa [#allocation4], 1 }

</bundles_post_ra>
